<compile_context>
chip_gen: v5e
topology: v5e:2x2
jax: 0.10.0
libtpu: 0.0.40
codegen_flags: <defaults>
</compile_context>

<pallas_src>
import jax
import jax.numpy as jnp
from jax.experimental import pallas as pl
from jax.experimental.pallas import tpu as pltpu

FEAT = 3          # input features
FEAT_PAD = 8      # padded to one sublane group; row FEAT carries the fc1 bias "ones"
HID = 100         # hidden width of fc1 / fc2
HID_PAD = 128     # padded to a lane-dense 128; unit HID is the "ones" unit
LANE_CHUNK = 256  # batch sub-block processed per inner step (bounds vreg pressure)


def mlp_kernel(x_ref, w1_ref, w2_ref, w3_ref, o_ref):
    """x_ref: (8, tb) f32 feature-major (row 3 == 1.0), w1_ref: (128, 8) f32,
    w2_ref: (128, 128) bf16, w3_ref: (128, 1) f32, o_ref: (1, tb) f32."""
    tb = x_ref.shape[1]
    # Static (fully unrolled) loop over 256-lane batch sub-blocks: each chunk's
    # h1/h2 stay near the vreg budget instead of materializing (128, tb) f32
    # intermediates through VMEM spill/replay on the single vst slot.
    for c in range(tb // LANE_CHUNK):
        cols = slice(c * LANE_CHUNK, (c + 1) * LANE_CHUNK)
        xc = x_ref[:, cols]                                        # (8, CH) f32
        # fc1 (+ bias via the ones row of x) on the MXU, K padded 3 -> 8.
        h1 = jnp.dot(w1_ref[...], xc, preferred_element_type=jnp.float32)
        h1 = jnp.maximum(h1, 0.0).astype(jnp.bfloat16)             # (128, CH)
        # fc2 (+ bias via the ones unit of h1): bf16 operands -> one native
        # MXU pass (legal on v5e/v6e/v7x MXUs), f32 accumulation.
        h2 = jnp.dot(w2_ref[...], h1, preferred_element_type=jnp.float32)
        h2 = jnp.maximum(h2, 0.0)                                  # (128, CH) f32
        # fc3 (+ bias via the ones unit of h2): hidden dim is on sublanes in
        # this layout, so this is a cheap sublane reduction (VPU adds + one
        # XLU step), not the previous cross-lane reduce.
        logits = jnp.sum(h2 * w3_ref[...], axis=0, keepdims=True)  # (1, CH)
        o_ref[:, cols] = jax.nn.sigmoid(logits)


def mlp_forward(x, w1p, w2p, w3p, *, tb=2048):
    """x: (B, 3) f32; packed params from pack_params(). Returns (B, 1) f32."""
    B = x.shape[0]
    # Don't over-pad tiny batches; keep tb a multiple of the inner sub-block.
    tb = min(tb, pl.cdiv(B, LANE_CHUNK) * LANE_CHUNK)
    assert tb % LANE_CHUNK == 0 and tb % 128 == 0
    n_tiles = pl.cdiv(B, tb)
    b_pad = n_tiles * tb
    # (On v7x, best TensorCore balance when n_tiles is even.)

    # Feature-major, lane-dense input slab: rows 0..2 = x^T, row 3 = 1.0
    # (carries the fc1 bias), rows 4..7 = 0.  Layout plumbing only.
    xt = jnp.zeros((FEAT_PAD, b_pad), jnp.float32)
    xt = xt.at[:FEAT, :B].set(x.T.astype(jnp.float32))
    xt = xt.at[FEAT, :].set(1.0)

    out = pl.pallas_call(
        mlp_kernel,
        out_shape=jax.ShapeDtypeStruct((1, b_pad), jnp.float32),
        grid=(n_tiles,),
        in_specs=[
            # batch-tiled activations: 8 contiguous rows of tb*4 B -> clean DMA
            pl.BlockSpec((FEAT_PAD, tb), lambda i: (0, i)),
            # weights: constant block index -> resident in VMEM across the grid
            pl.BlockSpec((HID_PAD, FEAT_PAD), lambda i: (0, 0)),
            pl.BlockSpec((HID_PAD, HID_PAD), lambda i: (0, 0)),
            pl.BlockSpec((HID_PAD, 1), lambda i: (0, 0)),
        ],
        # lane-dense output slab: one contiguous (1, tb) row per grid step
        out_specs=pl.BlockSpec((1, tb), lambda i: (0, i)),
        compiler_params=pltpu.CompilerParams(
            # batch axis is independent -> lets v7x split it over both TCs
            dimension_semantics=("parallel",),
            # footprint is small (<~2 MiB at tb=2048); explicit headroom anyway
            vmem_limit_bytes=32 * 1024 * 1024,
        ),
    )(xt, w1p, w2p, w3p)

    # row r of the batch lives at out[0, r]; slice padding off and restore (B, 1)
    return out[0, :B].reshape(B, 1)


def init_params(key):
    """nn.Linear default init: W, b ~ U(-1/sqrt(fan_in), +1/sqrt(fan_in)),
    stored in PyTorch layout (out_features, in_features)."""
    def linear(k, fan_in, fan_out):
        kw, kb = jax.random.split(k)
        bound = 1.0 / float(fan_in) ** 0.5
        w = jax.random.uniform(kw, (fan_out, fan_in), jnp.float32, -bound, bound)
        b = jax.random.uniform(kb, (fan_out,), jnp.float32, -bound, bound)
        return w, b

    k1, k2, k3 = jax.random.split(key, 3)
    w1, b1 = linear(k1, FEAT, HID)
    w2, b2 = linear(k2, HID, HID)
    w3, b3 = linear(k3, HID, 1)
    return w1, b1, w2, b2, w3, b3


def pack_params(params):
    """Pad hidden 100->128 / features 3->8 and fold every bias into its weight
    matrix via an always-on "ones" path:
      * x row 3 == 1.0                    -> column 3   of W1p carries b1
      * hidden unit 100 forced to relu(1)=1 -> column 100 of W2p carries b2 and
        entry 100 of W3p carries b3.
    Zero padding elsewhere leaves the math identical to the PyTorch module."""
    w1, b1, w2, b2, w3, b3 = params

    w1p = jnp.zeros((HID_PAD, FEAT_PAD), jnp.float32)
    w1p = w1p.at[:HID, :FEAT].set(w1)
    w1p = w1p.at[:HID, FEAT].set(b1)
    w1p = w1p.at[HID, FEAT].set(1.0)           # ones unit: relu(1) = 1

    w2p = jnp.zeros((HID_PAD, HID_PAD), jnp.float32)
    w2p = w2p.at[:HID, :HID].set(w2)
    w2p = w2p.at[:HID, HID].set(b2)
    w2p = w2p.at[HID, HID].set(1.0)            # propagate the ones unit
    w2p = w2p.astype(jnp.bfloat16)             # fc2 runs as a native bf16 MXU pass

    w3p = jnp.zeros((HID_PAD, 1), jnp.float32)
    w3p = w3p.at[:HID, 0].set(w3[0])
    w3p = w3p.at[HID, 0].set(b3[0])
    return w1p, w2p, w3p


def mlp_reference(x, params):
    w1, b1, w2, b2, w3, b3 = params
    h = jnp.maximum(x @ w1.T + b1, 0.0)
    h = jnp.maximum(h @ w2.T + b2, 0.0)
    return jax.nn.sigmoid(h @ w3.T + b3)


if __name__ == "__main__":
    key = jax.random.PRNGKey(0)
    kx, kp = jax.random.split(key)

    params = init_params(kp)      # PyTorch-equivalent f32 params
    packed = pack_params(params)  # padded / bias-folded kernel params

    # Small single-tile batch and a larger two-tile batch (even tile count so
    # both v7x TensorCores get equal work) exercise both grid paths.
    for batch in (8, 4000):
        x = jax.random.normal(jax.random.fold_in(kx, batch), (batch, FEAT), jnp.float32)
        out = jax.block_until_ready(mlp_forward(x, *packed))
        ref = mlp_reference(x, params)
        assert out.shape == (batch, 1)
        err = float(jnp.max(jnp.abs(out - ref)))
        # fc2 uses bf16 operands (f32 accumulation) -> tolerance relaxed per review.
        assert err < 5e-3, f"mismatch vs reference at batch={batch}: max err {err}"

    print("KERNEL_OK")
</pallas_src>

<mosaic_0001>
module attributes {stable_mosaic.version = 11 : i64} {
  func.func @mlp_kernel(%arg0: i32, %arg1: memref<8x256xf32, #tpu.memory_space<vmem>>, %arg2: memref<128x8xf32, #tpu.memory_space<vmem>>, %arg3: memref<128x128xbf16, #tpu.memory_space<vmem>>, %arg4: memref<128x1xf32, #tpu.memory_space<vmem>>, %arg5: memref<1x256xf32, #tpu.memory_space<vmem>>) attributes {dimension_semantics = [#tpu.dimension_semantics<parallel>], iteration_bounds = array<i64: 1>, scalar_prefetch = 0 : i64, scratch_operands = 0 : i64, tpu.core_type = #tpu.core_type<tc>, window_params = [{transform_indices = @transform_0, window_bounds = array<i64: 8, 256>}, {pipeline_mode = #tpu.pipeline_mode<synchronous>, transform_indices = @transform_1, window_bounds = array<i64: 128, 8>}, {pipeline_mode = #tpu.pipeline_mode<synchronous>, transform_indices = @transform_2, window_bounds = array<i64: 128, 128>}, {pipeline_mode = #tpu.pipeline_mode<synchronous>, transform_indices = @transform_3, window_bounds = array<i64: 128, 1>}, {transform_indices = @transform_4, window_bounds = array<i64: 1, 256>}]} {
    %c0 = arith.constant 0 : index
    %c0_0 = arith.constant 0 : index
    %0 = vector.load %arg1[%c0, %c0_0] : memref<8x256xf32, #tpu.memory_space<vmem>>, vector<8x256xf32>
    %c0_1 = arith.constant 0 : index
    %c0_2 = arith.constant 0 : index
    %1 = vector.load %arg2[%c0_1, %c0_2] : memref<128x8xf32, #tpu.memory_space<vmem>>, vector<128x8xf32>
    %cst = arith.constant dense<0.000000e+00> : vector<128x256xf32>
    %2 = tpu.matmul %1, %0, %cst {dimension_numbers = #tpu.dot_dimension_numbers<[1], [0], [0], [1], [0, 0, 1, 1], [], []>} : vector<128x8xf32>, vector<8x256xf32>, vector<128x256xf32> -> vector<128x256xf32>
    %cst_3 = arith.constant 0.000000e+00 : f32
    %3 = vector.broadcast %cst_3 : f32 to vector<128x256xf32>
    %4 = arith.maximumf %2, %3 : vector<128x256xf32>
    %5 = arith.truncf %4 : vector<128x256xf32> to vector<128x256xbf16>
    %c0_4 = arith.constant 0 : index
    %c0_5 = arith.constant 0 : index
    %6 = vector.load %arg3[%c0_4, %c0_5] : memref<128x128xbf16, #tpu.memory_space<vmem>>, vector<128x128xbf16>
    %cst_6 = arith.constant dense<0.000000e+00> : vector<128x256xf32>
    %7 = tpu.matmul %6, %5, %cst_6 {dimension_numbers = #tpu.dot_dimension_numbers<[1], [0], [0], [1], [0, 0, 1, 1], [], []>} : vector<128x128xbf16>, vector<128x256xbf16>, vector<128x256xf32> -> vector<128x256xf32>
    %cst_7 = arith.constant 0.000000e+00 : f32
    %8 = vector.broadcast %cst_7 : f32 to vector<128x256xf32>
    %9 = arith.maximumf %7, %8 : vector<128x256xf32>
    %c0_8 = arith.constant 0 : index
    %c0_9 = arith.constant 0 : index
    %10 = vector.load %arg4[%c0_8, %c0_9] : memref<128x1xf32, #tpu.memory_space<vmem>>, vector<128x1xf32>
    %11 = vector.broadcast %10 : vector<128x1xf32> to vector<128x256xf32>
    %12 = arith.mulf %9, %11 : vector<128x256xf32>
    %cst_10 = arith.constant dense<0.000000e+00> : vector<256xf32>
    %13 = vector.multi_reduction <add>, %12, %cst_10 [0] : vector<128x256xf32> to vector<256xf32>
    %14 = vector.shape_cast %13 : vector<256xf32> to vector<1x256xf32>
    %15 = arith.negf %14 : vector<1x256xf32>
    %16 = math.exp %15 : vector<1x256xf32>
    %cst_11 = arith.constant 1.000000e+00 : f32
    %17 = vector.broadcast %cst_11 : f32 to vector<1x256xf32>
    %18 = arith.addf %17, %16 : vector<1x256xf32>
    %19 = arith.divf %17, %18 : vector<1x256xf32>
    %c0_12 = arith.constant 0 : index
    %c0_13 = arith.constant 0 : index
    %20 = vector.load %arg5[%c0_12, %c0_13] : memref<1x256xf32, #tpu.memory_space<vmem>>, vector<1x256xf32>
    tpu.vector_store %arg5[%c0_12, %c0_13], %19 {strides = array<i32>} : memref<1x256xf32, #tpu.memory_space<vmem>>, vector<1x256xf32>,
    return
  }
  func.func @transform_0(%arg0: i32) -> (i32, i32) {
    %c0_i32 = arith.constant 0 : i32
    %c0_i32_0 = arith.constant 0 : i32
    return %c0_i32, %arg0 : i32, i32
  }
  func.func @transform_1(%arg0: i32) -> (i32, i32) {
    %c0_i32 = arith.constant 0 : i32
    %c0_i32_0 = arith.constant 0 : i32
    %c0_i32_1 = arith.constant 0 : i32
    return %c0_i32, %c0_i32_0 : i32, i32
  }
  func.func @transform_2(%arg0: i32) -> (i32, i32) {
    %c0_i32 = arith.constant 0 : i32
    %c0_i32_0 = arith.constant 0 : i32
    %c0_i32_1 = arith.constant 0 : i32
    return %c0_i32, %c0_i32_0 : i32, i32
  }
  func.func @transform_3(%arg0: i32) -> (i32, i32) {
    %c0_i32 = arith.constant 0 : i32
    %c0_i32_0 = arith.constant 0 : i32
    %c0_i32_1 = arith.constant 0 : i32
    return %c0_i32, %c0_i32_0 : i32, i32
  }
  func.func @transform_4(%arg0: i32) -> (i32, i32) {
    %c0_i32 = arith.constant 0 : i32
    %c0_i32_0 = arith.constant 0 : i32
    return %c0_i32, %arg0 : i32, i32
  }
}

</mosaic_0001>

<bundles_post_ra>
// kernel: tpu_custom_call.1
= control target key start
LH: loop header
LB: loop body
LE: loop exit
PB: predicated region body
PF: predicated region fallthrough
CT: control target
= control target key end

     0   :  { %vm36_vm0 = vcmask 64512   ;;  %s1017_s0 = inlined_call_operand.vmem [shape: f32[8,256], index: 0, kind: input, shape index: {}]   ;;  %s1018_s1 = inlined_call_operand.vmem [shape: f32[128,8], index: 1, kind: input, shape index: {}]   ;;  %s1019_s2 = inlined_call_operand.vmem [shape: bf16[128,128], index: 2, kind: input, shape index: {}]   ;;  %s1020_s3 = inlined_call_operand.vmem [shape: f32[128,1], index: 3, kind: input, shape index: {}]   ;;  %s1021_s4 = inlined_call_operand.hbm [shape: f32[1,256], index: 4, kind: output, shape index: {}]  }
   0x1   :  { %v18_v0 = vld [vmem:[%s1017_s0] sm:$0xff]  ;;  %v19_v1 = vld [vmem:[%s1017_s0 + $0x8] sm:$0xff] }
   0x2   :  { %v20_v2 = vld [vmem:[%s1018_s1] sm:$0xff]  ;;  %100 = vmatpush.msra.mxu0 %v18_v0  ;;  %165 = vmatpush.msra.mxu1 %v19_v1 }
   0x3   :  { %692 = vmatmul.msk.f32.vlgmr.msra.gmra.mxu0 %vm36_vm0, %v20_v2  ;;  %708 = vmatmul.msk.f32.vlgmr.msra.gmra.mxu1 %vm36_vm0, %v20_v2 }
   0x4   :  { %9 = vsyncpa [#allocation3], 0  ;;  %v21_v3 = vld [vmem:[%s1018_s1 + $0x8] sm:$0xff]  ;;  %v22_v4 = vld [vmem:[%s1018_s1 + $0x10] sm:$0xff]  ;;  %s683_s18 = sshll.u32 %s1021_s4, 4  ;;  %vm668_vm8 = vcmask 1040384   ;;  %s684_s18 = int_to_ptr.hbm [resolvable:$true] %s683_s18 }
   0x5   :  { %v23_v5 = vld [vmem:[%s1018_s1 + $0x18] sm:$0xff]  ;;  %v24_v6 = vld [vmem:[%s1018_s1 + $0x20] sm:$0xff]  ;;  %v25_v7 = vld [vmem:[%s1018_s1 + $0x28] sm:$0xff] }
   0x6   :  { %v26_v8 = vld [vmem:[%s1018_s1 + $0x30] sm:$0xff]  ;;  %v27_v9 = vld [vmem:[%s1018_s1 + $0x38] sm:$0xff]  ;;  %v28_v10 = vld [vmem:[%s1018_s1 + $0x40] sm:$0xff] }
   0x7   :  { %v29_v11 = vld [vmem:[%s1018_s1 + $0x48] sm:$0xff]  ;;  %v30_v12 = vld [vmem:[%s1018_s1 + $0x50] sm:$0xff]  ;;  %v31_v13 = vld [vmem:[%s1018_s1 + $0x58] sm:$0xff] }
   0x8   :  { %v32_v14 = vld [vmem:[%s1018_s1 + $0x60] sm:$0xff]  ;;  %v33_v15 = vld [vmem:[%s1018_s1 + $0x68] sm:$0xff]  ;;  %v34_v16 = vld [vmem:[%s1018_s1 + $0x70] sm:$0xff] }
   0x9   :  { %v35_v17 = vld [vmem:[%s1018_s1 + $0x78] sm:$0xff] }
   0xb   :  { %693 = vmatmul.msk.f32.gmra.mxu0 %vm36_vm0, %v21_v3  ;;  %709 = vmatmul.msk.f32.gmra.mxu1 %vm36_vm0, %v21_v3 }
  0x13   :  { %694 = vmatmul.msk.f32.gmra.mxu0 %vm36_vm0, %v22_v4  ;;  %710 = vmatmul.msk.f32.gmra.mxu1 %vm36_vm0, %v22_v4 }
  0x1b   :  { %695 = vmatmul.msk.f32.gmra.mxu0 %vm36_vm0, %v23_v5  ;;  %711 = vmatmul.msk.f32.gmra.mxu1 %vm36_vm0, %v23_v5 }
  0x23   :  { %696 = vmatmul.msk.f32.gmra.mxu0 %vm36_vm0, %v24_v6  ;;  %712 = vmatmul.msk.f32.gmra.mxu1 %vm36_vm0, %v24_v6 }
  0x2b   :  { %697 = vmatmul.msk.f32.gmra.mxu0 %vm36_vm0, %v25_v7  ;;  %713 = vmatmul.msk.f32.gmra.mxu1 %vm36_vm0, %v25_v7 }
  0x33   :  { %698 = vmatmul.msk.f32.gmra.mxu0 %vm36_vm0, %v26_v8  ;;  %714 = vmatmul.msk.f32.gmra.mxu1 %vm36_vm0, %v26_v8 }
  0x3b   :  { %699 = vmatmul.msk.f32.gmra.mxu0 %vm36_vm0, %v27_v9  ;;  %715 = vmatmul.msk.f32.gmra.mxu1 %vm36_vm0, %v27_v9 }
  0x43   :  { %700 = vmatmul.msk.f32.gmra.mxu0 %vm36_vm0, %v28_v10  ;;  %716 = vmatmul.msk.f32.gmra.mxu1 %vm36_vm0, %v28_v10 }
  0x4b   :  { %701 = vmatmul.msk.f32.gmra.mxu0 %vm36_vm0, %v29_v11  ;;  %717 = vmatmul.msk.f32.gmra.mxu1 %vm36_vm0, %v29_v11 }
  0x53   :  { %702 = vmatmul.msk.f32.gmra.mxu0 %vm36_vm0, %v30_v12  ;;  %718 = vmatmul.msk.f32.gmra.mxu1 %vm36_vm0, %v30_v12 }
  0x5b   :  { %703 = vmatmul.msk.f32.gmra.mxu0 %vm36_vm0, %v31_v13  ;;  %719 = vmatmul.msk.f32.gmra.mxu1 %vm36_vm0, %v31_v13 }
  0x63   :  { %704 = vmatmul.msk.f32.gmra.mxu0 %vm36_vm0, %v32_v14  ;;  %720 = vmatmul.msk.f32.gmra.mxu1 %vm36_vm0, %v32_v14 }
  0x6b   :  { %705 = vmatmul.msk.f32.gmra.mxu0 %vm36_vm0, %v33_v15  ;;  %721 = vmatmul.msk.f32.gmra.mxu1 %vm36_vm0, %v33_v15 }
  0x73   :  { %706 = vmatmul.msk.f32.gmra.mxu0 %vm36_vm0, %v34_v16  ;;  %722 = vmatmul.msk.f32.gmra.mxu1 %vm36_vm0, %v34_v16 }
  0x7b   :  { %707 = vmatmul.msk.f32.gmra.mxu0 %vm36_vm0, %v35_v17  ;;  %723 = vmatmul.msk.f32.gmra.mxu1 %vm36_vm0, %v35_v17 }
  0x80   :  { %v102_v18 = vpop.f32.mrf.mxu0  ;;  %v167_v19 = vpop.f32.mrf.mxu1 }
  0x81   :  { %v215_v22 = vmax.f32 %v102_v18, 0.0  ;;  %v216_v23 = vmax.f32 %v167_v19, 0.0 }
  0x88   :  { %v105_v20 = vpop.f32.mrf.mxu0  ;;  %v170_v21 = vpop.f32.mrf.mxu1 }
  0x89   :  { %v217_v24 = vmax.f32 %v105_v20, 0.0  ;;  %v218_v25 = vmax.f32 %v170_v21, 0.0 }
  0x8b   :  { %v918_v26 = vpack.c.bf16 %v217_v24, %v215_v22  ;;  %v920_v27 = vpack.c.bf16 %v218_v25, %v216_v23 }
  0x90   :  { %v108_v28 = vpop.f32.mrf.mxu0  ;;  %v173_v29 = vpop.f32.mrf.mxu1 }
  0x91   :  { %v219_v32 = vmax.f32 %v108_v28, 0.0  ;;  %v220_v33 = vmax.f32 %v173_v29, 0.0 }
  0x98   :  { %v111_v30 = vpop.f32.mrf.mxu0  ;;  %v176_v31 = vpop.f32.mrf.mxu1 }
  0x99   :  { %v221_v34 = vmax.f32 %v111_v30, 0.0  ;;  %v222_v35 = vmax.f32 %v176_v31, 0.0 }
  0x9b   :  { %v922_v36 = vpack.c.bf16 %v221_v34, %v219_v32  ;;  %v924_v37 = vpack.c.bf16 %v222_v35, %v220_v33 }
  0xa0   :  { %v114_v38 = vpop.f32.mrf.mxu0  ;;  %v179_v39 = vpop.f32.mrf.mxu1 }
  0xa1   :  { %v223_v42 = vmax.f32 %v114_v38, 0.0  ;;  %v224_v43 = vmax.f32 %v179_v39, 0.0  ;;  %v457_v38 = vld [vmem:[%s1020_s3] sm:$0xff]  ;;  %v805_v39 = vmov 0  }
  0xa2   :  { %768 = vset.pattern.permute.xlu0 %v805_v39  ;;  %769 = vset.pattern.permute.xlu1 %v805_v39 }
  0xa3   :  { %475 = vperm.xlu0 %768, %v457_v38   ;;  %770 = vset.pattern.permute.xlu2 %v805_v39 }
  0xa8   :  { %v117_v40 = vpop.f32.mrf.mxu0  ;;  %v182_v41 = vpop.f32.mrf.mxu1 }
  0xa9   :  { %v225_v44 = vmax.f32 %v117_v40, 0.0  ;;  %v226_v45 = vmax.f32 %v182_v41, 0.0  ;;  %v458_v40 = vld [vmem:[%s1020_s3 + $0x8] sm:$0xff]  ;;  %v758_v41 = vld [vmem:[%s1019_s2] sm:$0xff] }
  0xab   :  { %v926_v46 = vpack.c.bf16 %v225_v44, %v223_v42  ;;  %v928_v47 = vpack.c.bf16 %v226_v45, %v224_v43  ;;  %480 = vperm.xlu0 %768, %v458_v40   ;;  %v459_v42 = vld [vmem:[%s1020_s3 + $0x10] sm:$0xff]  ;;  %v461_v43 = vld [vmem:[%s1020_s3 + $0x20] sm:$0xff]  ;;  %v464_v44 = vld [vmem:[%s1020_s3 + $0x38] sm:$0xff] }
  0xac   :  { %485 = vperm.xlu1 %769, %v459_v42   ;;  %495 = vperm.xlu2 %770, %v461_v43   ;;  %v761_v45 = vld [vmem:[%s1019_s2 + $0x18] sm:$0xff] }
  0xb0   :  { %v120_v48 = vpop.f32.mrf.mxu0  ;;  %v185_v49 = vpop.f32.mrf.mxu1 }
  0xb1   :  { %v227_v52 = vmax.f32 %v120_v48, 0.0  ;;  %v228_v53 = vmax.f32 %v185_v49, 0.0  ;;  %v467_v48 = vld [vmem:[%s1020_s3 + $0x50] sm:$0xff]  ;;  %v469_v49 = vld [vmem:[%s1020_s3 + $0x60] sm:$0xff] }
  0xb8   :  { %v123_v50 = vpop.f32.mrf.mxu0  ;;  %v188_v51 = vpop.f32.mrf.mxu1 }
  0xb9   :  { %v229_v54 = vmax.f32 %v123_v50, 0.0  ;;  %v230_v55 = vmax.f32 %v188_v51, 0.0  ;;  %v762_v50 = vld [vmem:[%s1019_s2 + $0x20] sm:$0xff]  ;;  %v472_v51 = vld [vmem:[%s1020_s3 + $0x78] sm:$0xff] }
  0xbb   :  { %v253_v56 = vpack.c.bf16 %v229_v54, %v227_v52  ;;  %v254_v57 = vpack.c.bf16 %v230_v55, %v228_v53  ;;  %v470_v52 = vld [vmem:[%s1020_s3 + $0x68] sm:$0xff]  ;;  %v465_v53 = vld [vmem:[%s1020_s3 + $0x40] sm:$0xff]  ;;  %v468_v55 = vld [vmem:[%s1020_s3 + $0x58] sm:$0xff] }
  0xbc   :  { %v763_v54 = vld [vmem:[%s1019_s2 + $0x28] sm:$0xff] }
  0xc0   :  { %v126_v58 = vpop.f32.mrf.mxu0  ;;  %v191_v59 = vpop.f32.mrf.mxu1 }
  0xc1   :  { %v231_v32 = vmax.f32 %v126_v58, 0.0  ;;  %v232_v33 = vmax.f32 %v191_v59, 0.0  ;;  %v765_v58 = vld [vmem:[%s1019_s2 + $0x38] sm:$0xff] }
  0xc8   :  { %v129_v60 = vpop.f32.mrf.mxu0  ;;  %v194_v61 = vpop.f32.mrf.mxu1 }
  0xc9   :  { %v233_v28 = vmax.f32 %v129_v60, 0.0  ;;  %v234_v29 = vmax.f32 %v194_v61, 0.0 }
  0xcb   :  { %v255_v34 = vpack.c.bf16 %v233_v28, %v231_v32  ;;  %v256_v35 = vpack.c.bf16 %v234_v29, %v232_v33 }
  0xd0   :  { %v132_v62 = vpop.f32.mrf.mxu0  ;;  %v197_v63 = vpop.f32.mrf.mxu1 }
  0xd1   :  { %v235_v24 = vmax.f32 %v132_v62, 0.0  ;;  %v236_v25 = vmax.f32 %v197_v63, 0.0 }
  0xd8   :  { %v135_v0 = vpop.f32.mrf.mxu0  ;;  %v200_v1 = vpop.f32.mrf.mxu1 }
  0xd9   :  { %v237_v20 = vmax.f32 %v135_v0, 0.0  ;;  %v238_v21 = vmax.f32 %v200_v1, 0.0 }
  0xdb   :  { %v257_v30 = vpack.c.bf16 %v237_v20, %v235_v24  ;;  %v258_v31 = vpack.c.bf16 %v238_v21, %v236_v25 }
  0xe0   :  { %v138_v2 = vpop.f32.mrf.mxu0  ;;  %v203_v3 = vpop.f32.mrf.mxu1 }
  0xe1   :  { %v239_v18 = vmax.f32 %v138_v2, 0.0  ;;  %v240_v19 = vmax.f32 %v203_v3, 0.0 }
  0xe8   :  { %v141_v4 = vpop.f32.mrf.mxu0  ;;  %v206_v5 = vpop.f32.mrf.mxu1 }
  0xe9   :  { %v241_v14 = vmax.f32 %v141_v4, 0.0  ;;  %v242_v15 = vmax.f32 %v206_v5, 0.0 }
  0xeb   :  { %v259_v22 = vpack.c.bf16 %v241_v14, %v239_v18  ;;  %v260_v23 = vpack.c.bf16 %v242_v15, %v240_v19 }
  0xf0   :  { %v144_v6 = vpop.f32.mrf.mxu0  ;;  %v209_v7 = vpop.f32.mrf.mxu1 }
  0xf1   :  { %v243_v10 = vmax.f32 %v144_v6, 0.0  ;;  %v244_v11 = vmax.f32 %v209_v7, 0.0 }
  0xf8   :  { %v147_v8 = vpop.f32.mrf.mxu0  ;;  %v212_v9 = vpop.f32.mrf.mxu1 }
  0xf9   :  { %v245_v12 = vmax.f32 %v147_v8, 0.0  ;;  %v246_v13 = vmax.f32 %v212_v9, 0.0 }
  0xfb   :  { %v261_v16 = vpack.c.bf16 %v245_v12, %v243_v10  ;;  %v262_v17 = vpack.c.bf16 %v246_v13, %v244_v11 }
  0xfd   :  { %327 = vmatpush.bf16.msra.mxu2 %v261_v16  ;;  %376 = vmatpush.bf16.msra.mxu3 %v262_v17 }
 0x101   :  { %328 = vmatpush.bf16.msra.mxu2 %v259_v22  ;;  %377 = vmatpush.bf16.msra.mxu3 %v260_v23 }
 0x105   :  { %329 = vmatpush.bf16.msra.mxu2 %v257_v30  ;;  %378 = vmatpush.bf16.msra.mxu3 %v258_v31 }
 0x106   :  { %v496_v31 = vpop.permute.xlu2 %495 }
 0x109   :  { %330 = vmatpush.bf16.msra.mxu2 %v255_v34  ;;  %379 = vmatpush.bf16.msra.mxu3 %v256_v35 }
 0x10d   :  { %331 = vmatpush.bf16.msra.mxu2 %v253_v56  ;;  %380 = vmatpush.bf16.msra.mxu3 %v254_v57  ;;  %v471_v56 = vld [vmem:[%s1020_s3 + $0x70] sm:$0xff] }
 0x10e   :  { %v764_v57 = vld [vmem:[%s1019_s2 + $0x30] sm:$0xff] }
 0x111   :  { %332 = vmatpush.bf16.msra.mxu2 %v926_v46  ;;  %381 = vmatpush.bf16.msra.mxu3 %v928_v47  ;;  %v462_v46 = vld [vmem:[%s1020_s3 + $0x28] sm:$0xff] }
 0x112   :  { %v466_v47 = vld [vmem:[%s1020_s3 + $0x48] sm:$0xff]  ;;  %500 = vperm.xlu2 %770, %v462_v46  }
 0x115   :  { %333 = vmatpush.bf16.msra.mxu2 %v922_v36  ;;  %382 = vmatpush.bf16.msra.mxu3 %v924_v37  ;;  %v460_v36 = vld [vmem:[%s1020_s3 + $0x18] sm:$0xff]  ;;  %v759_v37 = vld [vmem:[%s1019_s2 + $0x8] sm:$0xff]  ;;  %v476_v59 = vpop.permute.xlu0 %475 }
 0x116   :  { %490 = vperm.xlu1 %769, %v460_v36  }
 0x119   :  { %334 = vmatpush.bf16.msra.mxu2 %v918_v26  ;;  %383 = vmatpush.bf16.msra.mxu3 %v920_v27  ;;  %v760_v26 = vld [vmem:[%s1019_s2 + $0x10] sm:$0xff]  ;;  %s806_s2 = smov [#allocation2]  }
 0x11a   :  { %v463_v27 = vld [vmem:[%s1020_s3 + $0x30] sm:$0xff]  ;;  %515 = vperm.xlu2 %770, %v465_v53   ;;  %s681_s3 = sshll.u32 %s806_s2, 4  ;;  %s682_s3 = int_to_ptr.vmem [resolvable:$true] %s681_s3 }
 0x11b   :  { %505 = vperm.xlu0 %768, %v463_v27  }
 0x11c   :  { %335 = vmatmul.bf16.vlgmr.msra.gmra.mxu2 %v758_v41  ;;  %384 = vmatmul.bf16.vlgmr.msra.gmra.mxu3 %v758_v41 }
 0x11d   :  { %v481_v0 = vpop.permute.xlu0 %480 }
 0x11e   :  { %510 = vperm.xlu1 %769, %v464_v44   ;;  %v486_v11 = vpop.permute.xlu1 %485 }
 0x122   :  { %530 = vperm.xlu2 %770, %v468_v55  }
 0x123   :  { %520 = vperm.xlu0 %768, %v466_v47  }
 0x126   :  { %525 = vperm.xlu1 %769, %v467_v48  }
 0x12a   :  { %545 = vperm.xlu2 %770, %v471_v56  }
 0x12b   :  { %535 = vperm.xlu0 %768, %v469_v49  }
 0x12c   :  { %340 = vmatmul.bf16.gmra.mxu2 %v759_v37  ;;  %389 = vmatmul.bf16.gmra.mxu3 %v759_v37 }
 0x12e   :  { %540 = vperm.xlu1 %769, %v470_v52  }
 0x133   :  { %550 = vperm.xlu0 %768, %v472_v51  }
 0x13c   :  { %345 = vmatmul.bf16.gmra.mxu2 %v760_v26  ;;  %394 = vmatmul.bf16.gmra.mxu3 %v760_v26 }
 0x14c   :  { %350 = vmatmul.bf16.gmra.mxu2 %v761_v45  ;;  %399 = vmatmul.bf16.gmra.mxu3 %v761_v45 }
 0x15c   :  { %355 = vmatmul.bf16.gmra.mxu2 %v762_v50  ;;  %404 = vmatmul.bf16.gmra.mxu3 %v762_v50 }
 0x16c   :  { %360 = vmatmul.bf16.gmra.mxu2 %v763_v54  ;;  %409 = vmatmul.bf16.gmra.mxu3 %v763_v54  ;;  %v501_v52 = vpop.permute.xlu2 %500 }
 0x17c   :  { %365 = vmatmul.bf16.gmra.mxu2 %v764_v57  ;;  %414 = vmatmul.bf16.gmra.mxu3 %v764_v57 }
 0x188   :  { %v491_v20 = vpop.permute.xlu1 %490 }
 0x18c   :  { %370 = vmatmul.bf16.gmra.mxu2 %v765_v58  ;;  %419 = vmatmul.bf16.gmra.mxu3 %v765_v58 }
 0x18d   :  { %v506_v53 = vpop.permute.xlu0 %505 }
 0x19f   :  { %v336_v60 = vpop.f32.mrf.mxu2  ;;  %v385_v61 = vpop.f32.mrf.mxu3 }
 0x1a0   :  { %v425_v62 = vmax.f32 %v336_v60, 0.0  ;;  %v426_v63 = vmax.f32 %v385_v61, 0.0  ;;  %v511_v60 = vpop.permute.xlu1 %510 }
 0x1a2   :  { %v553_v5 = vmul.f32 %v476_v59, %v425_v62  ;;  %v554_v6 = vmul.f32 %v476_v59, %v426_v63 }
 0x1a7   :  { %v338_v1 = vpop.f32.mrf.mxu2  ;;  %v387_v2 = vpop.f32.mrf.mxu3 }
 0x1a8   :  { %v427_v3 = vmax.f32 %v338_v1, 0.0  ;;  %v428_v4 = vmax.f32 %v387_v2, 0.0  ;;  %v516_v1 = vpop.permute.xlu2 %515 }
 0x1aa   :  { %v555_v7 = vmul.f32 %v481_v0, %v427_v3  ;;  %v556_v8 = vmul.f32 %v481_v0, %v428_v4  ;;  %v521_v4 = vpop.permute.xlu0 %520 }
 0x1ac   :  { %v585_v9 = vadd.f32 %v555_v7, %v553_v5  ;;  %v606_v10 = vadd.f32 %v556_v8, %v554_v6 }
 0x1af   :  { %v341_v12 = vpop.f32.mrf.mxu2  ;;  %v390_v13 = vpop.f32.mrf.mxu3 }
 0x1b0   :  { %v429_v14 = vmax.f32 %v341_v12, 0.0  ;;  %v430_v15 = vmax.f32 %v390_v13, 0.0 }
 0x1b2   :  { %v557_v16 = vmul.f32 %v486_v11, %v429_v14  ;;  %v558_v17 = vmul.f32 %v486_v11, %v430_v15 }
 0x1b4   :  { %v586_v18 = vadd.f32 %v585_v9, %v557_v16  ;;  %v607_v19 = vadd.f32 %v606_v10, %v558_v17 }
 0x1b7   :  { %v343_v21 = vpop.f32.mrf.mxu2  ;;  %v392_v22 = vpop.f32.mrf.mxu3 }
 0x1b8   :  { %v431_v23 = vmax.f32 %v343_v21, 0.0  ;;  %v432_v24 = vmax.f32 %v392_v22, 0.0 }
 0x1ba   :  { %v559_v25 = vmul.f32 %v491_v20, %v431_v23  ;;  %v560_v28 = vmul.f32 %v491_v20, %v432_v24 }
 0x1bc   :  { %v587_v29 = vadd.f32 %v586_v18, %v559_v25  ;;  %v608_v30 = vadd.f32 %v607_v19, %v560_v28  ;;  %v526_v19 = vpop.permute.xlu1 %525  ;;  %v531_v28 = vpop.permute.xlu2 %530 }
 0x1bf   :  { %v346_v32 = vpop.f32.mrf.mxu2  ;;  %v395_v33 = vpop.f32.mrf.mxu3 }
 0x1c0   :  { %v433_v34 = vmax.f32 %v346_v32, 0.0  ;;  %v434_v35 = vmax.f32 %v395_v33, 0.0 }
 0x1c2   :  { %v561_v38 = vmul.f32 %v496_v31, %v433_v34  ;;  %v562_v39 = vmul.f32 %v496_v31, %v434_v35  ;;  %v536_v35 = vpop.permute.xlu0 %535 }
 0x1c4   :  { %v588_v40 = vadd.f32 %v587_v29, %v561_v38  ;;  %v609_v41 = vadd.f32 %v608_v30, %v562_v39 }
 0x1c7   :  { %v348_v42 = vpop.f32.mrf.mxu2  ;;  %v397_v36 = vpop.f32.mrf.mxu3 }
 0x1c8   :  { %v435_v54 = vmax.f32 %v348_v42, 0.0  ;;  %v436_v55 = vmax.f32 %v397_v36, 0.0 }
 0x1ca   :  { %v563_v61 = vmul.f32 %v501_v52, %v435_v54  ;;  %v564_v62 = vmul.f32 %v501_v52, %v436_v55  ;;  %v546_v55 = vpop.permute.xlu2 %545 }
 0x1cc   :  { %v589_v7 = vadd.f32 %v588_v40, %v563_v61  ;;  %v610_v8 = vadd.f32 %v609_v41, %v564_v62 }
 0x1cf   :  { %v351_v37 = vpop.f32.mrf.mxu2  ;;  %v400_v26 = vpop.f32.mrf.mxu3 }
 0x1d0   :  { %v437_v58 = vmax.f32 %v351_v37, 0.0  ;;  %v438_v59 = vmax.f32 %v400_v26, 0.0 }
 0x1d2   :  { %v565_v2 = vmul.f32 %v506_v53, %v437_v58  ;;  %v566_v3 = vmul.f32 %v506_v53, %v438_v59 }
 0x1d4   :  { %v590_v15 = vadd.f32 %v589_v7, %v565_v2  ;;  %v611_v16 = vadd.f32 %v610_v8, %v566_v3  ;;  %v551_v2 = vpop.permute.xlu0 %550 }
 0x1d7   :  { %v353_v27 = vpop.f32.mrf.mxu2  ;;  %v402_v43 = vpop.f32.mrf.mxu3 }
 0x1d8   :  { %v439_v63 = vmax.f32 %v353_v27, 0.0  ;;  %v440_v0 = vmax.f32 %v402_v43, 0.0 }
 0x1da   :  { %v567_v9 = vmul.f32 %v511_v60, %v439_v63  ;;  %v568_v10 = vmul.f32 %v511_v60, %v440_v0 }
 0x1dc   :  { %v591_v22 = vadd.f32 %v590_v15, %v567_v9  ;;  %v612_v23 = vadd.f32 %v611_v16, %v568_v10 }
 0x1df   :  { %v356_v44 = vpop.f32.mrf.mxu2  ;;  %v405_v45 = vpop.f32.mrf.mxu3 }
 0x1e0   :  { %v441_v5 = vmax.f32 %v356_v44, 0.0  ;;  %v442_v6 = vmax.f32 %v405_v45, 0.0 }
 0x1e2   :  { %v569_v17 = vmul.f32 %v516_v1, %v441_v5  ;;  %v570_v18 = vmul.f32 %v516_v1, %v442_v6 }
 0x1e4   :  { %v592_v31 = vadd.f32 %v591_v22, %v569_v17  ;;  %v613_v32 = vadd.f32 %v612_v23, %v570_v18 }
 0x1e7   :  { %v358_v46 = vpop.f32.mrf.mxu2  ;;  %v407_v47 = vpop.f32.mrf.mxu3 }
 0x1e8   :  { %v443_v11 = vmax.f32 %v358_v46, 0.0  ;;  %v444_v12 = vmax.f32 %v407_v47, 0.0 }
 0x1ea   :  { %v571_v24 = vmul.f32 %v521_v4, %v443_v11  ;;  %v572_v25 = vmul.f32 %v521_v4, %v444_v12 }
 0x1ec   :  { %v593_v40 = vadd.f32 %v592_v31, %v571_v24  ;;  %v614_v41 = vadd.f32 %v613_v32, %v572_v25 }
 0x1ef   :  { %v361_v48 = vpop.f32.mrf.mxu2  ;;  %v410_v49 = vpop.f32.mrf.mxu3 }
 0x1f0   :  { %v445_v20 = vmax.f32 %v361_v48, 0.0  ;;  %v446_v21 = vmax.f32 %v410_v49, 0.0 }
 0x1f2   :  { %v573_v33 = vmul.f32 %v526_v19, %v445_v20  ;;  %v574_v34 = vmul.f32 %v526_v19, %v446_v21 }
 0x1f4   :  { %v594_v44 = vadd.f32 %v593_v40, %v573_v33  ;;  %v615_v45 = vadd.f32 %v614_v41, %v574_v34 }
 0x1f7   :  { %v363_v50 = vpop.f32.mrf.mxu2  ;;  %v412_v51 = vpop.f32.mrf.mxu3 }
 0x1f8   :  { %v447_v29 = vmax.f32 %v363_v50, 0.0  ;;  %v448_v30 = vmax.f32 %v412_v51, 0.0  ;;  %v541_v50 = vpop.permute.xlu1 %540 }
 0x1fa   :  { %v575_v37 = vmul.f32 %v531_v28, %v447_v29  ;;  %v576_v26 = vmul.f32 %v531_v28, %v448_v30 }
 0x1fc   :  { %v595_v51 = vadd.f32 %v594_v44, %v575_v37  ;;  %v616_v52 = vadd.f32 %v615_v45, %v576_v26 }
 0x1ff   :  { %v366_v56 = vpop.f32.mrf.mxu2  ;;  %v415_v57 = vpop.f32.mrf.mxu3 }
 0x200   :  { %v449_v38 = vmax.f32 %v366_v56, 0.0  ;;  %v450_v39 = vmax.f32 %v415_v57, 0.0 }
 0x202   :  { %v577_v46 = vmul.f32 %v536_v35, %v449_v38  ;;  %v578_v47 = vmul.f32 %v536_v35, %v450_v39 }
 0x204   :  { %v596_v56 = vadd.f32 %v595_v51, %v577_v46  ;;  %v617_v57 = vadd.f32 %v616_v52, %v578_v47 }
 0x207   :  { %v368_v13 = vpop.f32.mrf.mxu2  ;;  %v417_v14 = vpop.f32.mrf.mxu3 }
 0x208   :  { %v451_v27 = vmax.f32 %v368_v13, 0.0  ;;  %v452_v43 = vmax.f32 %v417_v14, 0.0 }
 0x20a   :  { %v579_v53 = vmul.f32 %v541_v50, %v451_v27  ;;  %v580_v54 = vmul.f32 %v541_v50, %v452_v43  ;;  %v671_v27 = vlaneseq }
 0x20c   :  { %v597_v62 = vadd.f32 %v596_v56, %v579_v53  ;;  %v618_v63 = vadd.f32 %v617_v57, %v580_v54  ;;  %vm673_vm10 = vcmp.lt.s32.totalorder %v671_v27, 256 }
 0x20f   :  { %v371_v42 = vpop.f32.mrf.mxu2  ;;  %v420_v36 = vpop.f32.mrf.mxu3 }
 0x210   :  { %v453_v48 = vmax.f32 %v371_v42, 0.0  ;;  %v454_v49 = vmax.f32 %v420_v36, 0.0 }
 0x212   :  { %v581_v58 = vmul.f32 %v546_v55, %v453_v48  ;;  %v582_v59 = vmul.f32 %v546_v55, %v454_v49 }
 0x214   :  { %v598_v3 = vadd.f32 %v597_v62, %v581_v58  ;;  %v619_v4 = vadd.f32 %v618_v63, %v582_v59 }
 0x217   :  { %v373_v60 = vpop.f32.mrf.mxu2  ;;  %v422_v61 = vpop.f32.mrf.mxu3 }
 0x218   :  { %v455_v0 = vmax.f32 %v373_v60, 0.0  ;;  %v456_v1 = vmax.f32 %v422_v61, 0.0 }
 0x21a   :  { %v583_v5 = vmul.f32 %v551_v2, %v455_v0  ;;  %v584_v6 = vmul.f32 %v551_v2, %v456_v1 }
 0x21c   :  { %v599_v7 = vadd.f32 %v598_v3, %v583_v5  ;;  %v620_v8 = vadd.f32 %v619_v4, %v584_v6 }
 0x21e   :  { %v600_v9 = vrot.slane %v599_v7, 4  ;;  %v621_v10 = vrot.slane %v620_v8, 4 }
 0x220   :  { %v601_v11 = vadd.f32 %v600_v9, %v599_v7  ;;  %v622_v12 = vadd.f32 %v621_v10, %v620_v8 }
 0x222   :  { %v602_v13 = vrot.slane %v601_v11, 2  ;;  %v623_v14 = vrot.slane %v622_v12, 2 }
 0x224   :  { %v603_v15 = vadd.f32 %v602_v13, %v601_v11  ;;  %v624_v16 = vadd.f32 %v623_v14, %v622_v12 }
 0x226   :  { %v604_v17 = vrot.slane %v603_v15, 1  ;;  %v625_v18 = vrot.slane %v624_v16, 1 }
 0x228   :  { %v605_v19 = vadd.f32 %v604_v17, %v603_v15  ;;  %v626_v20 = vadd.f32 %v625_v18, %v624_v16 }
 0x22a   :  { %v756_v21 = vmul.f32 -1.442695, %v605_v19  ;;  %v757_v22 = vmul.f32 -1.442695, %v626_v20 }
 0x22c   :  { %771 = vpow2.f32 %v756_v21 }
 0x22d   :  { %773 = vpow2.f32 %v757_v22 }
 0x232   :  { %v772_v23 = vpop.eup %771 }
 0x233   :  { %v774_v24 = vpop.eup %773  ;;  %v633_v25 = vadd.f32 1.0, %v772_v23 }
 0x234   :  { %v634_v28 = vadd.f32 1.0, %v774_v24 }
 0x235   :  { %775 = vrcp.f32 %v633_v25  ;;  %vm640_vm3 = vweird.f32 %v633_v25  ;;  %v646_v42 = vand.u32 2147483648, %v633_v25  ;;  %v644_v37 = vand.u32 2147483647, %v633_v25 }
 0x236   :  { %777 = vrcp.f32 %v634_v28  ;;  %v661_v38 = vand.u32 2147483648, %v634_v28  ;;  %v659_v40 = vand.u32 2147483647, %v634_v28  ;;  %vm655_vm5 = vweird.f32 %v634_v28 }
 0x237   :  { %v647_v46 = vor.u32 1.1754944e-38, %v646_v42  ;;  %vm645_vm9 = vcmp.eq.f32.partialorder %v644_v37, 8.507059e+37 }
 0x238   :  { %v662_v43 = vor.u32 1.1754944e-38, %v661_v38  ;;  %vm660_vm7 = vcmp.eq.f32.partialorder %v659_v40, 8.507059e+37 }
 0x23b   :  { %v776_v29 = vpop.eup %775 }
 0x23c   :  { %v778_v30 = vpop.eup %777  ;;  %v636_v31 = vmul.f32 %v776_v29, %v633_v25  ;;  %vm641_vm1 = vweird.f32 %v776_v29 }
 0x23d   :  { %v651_v32 = vmul.f32 %v778_v30, %v634_v28  ;;  %vm656_vm2 = vweird.f32 %v778_v30  ;;  %vm1008_vm4 = vmor %vm640_vm3, %vm641_vm1 }
 0x23e   :  { %v637_v33 = vsub.f32 1.0, %v636_v31  ;;  %vm657_vm6 = vmor %vm655_vm5, %vm656_vm2 }
 0x23f   :  { %v652_v34 = vsub.f32 1.0, %v651_v32 }
 0x240   :  { %v638_v35 = vmul.f32 %v776_v29, %v637_v33 }
 0x241   :  { %v653_v39 = vmul.f32 %v778_v30, %v652_v34 }
 0x242   :  { %v639_v41 = vadd.f32 %v776_v29, %v638_v35 }
 0x243   :  { %v654_v26 = vadd.f32 %v778_v30, %v653_v39 }
 0x244   :  { %v643_v44 = vsel %vm1008_vm4, %v776_v29, %v639_v41 }
 0x245   :  { %v658_v45 = vsel %vm657_vm6, %v778_v30, %v654_v26  ;;  %v648_v49 = vsel %vm645_vm9, %v647_v46, %v643_v44 }
 0x246   :  { %v663_v47 = vsel %vm660_vm7, %v662_v43, %v658_v45 }
 0x247   :  { %v667_v48 = vrot.slane %v663_v47, 7 }
 0x249   :  { %v669_v50 = vsel %vm668_vm8, %v648_v49, %v667_v48 }
 0x24a   :  { %675 = vst.msk [vmem:[#allocation2] sm:$0x3] %vm673_vm10, %v669_v50 }
 0x24b   :  { %686 = dma.vmem_to_hbm [thread:$0]  %s682_s3, 32, %s684_s18, [#allocation3]  }
 0x24c   :  { %803 = dma.done.wait [#allocation3], 32  }
 0x24d   :  { %804 = vsyncadd [#allocation3], 4294967264 }
 0x24e   :  { %691 = vsyncpa [#allocation3], 1 }

</bundles_post_ra>
